<compile_context>
chip_gen: v7x
topology: tpu7x:2x2x1
jax: 0.10.0
libtpu: 0.0.40
codegen_flags: <defaults>
</compile_context>

<pallas_src>
import jax
import jax.numpy as jnp
from jax.experimental import pallas as pl
from jax.experimental.pallas import tpu as pltpu


def _ia_layer1_kernel(img_ref, pt_ref, w1_ref, b1_ref, w2_ref, b2_ref,
                      w3_ref, b3_ref, wc_ref, bc_ref, out_ref):
    img = img_ref[0]                     # (ic, N)  lane-dense
    pt = pt_ref[0]                       # (pc, N)  lane-dense

    # ---- attention path: all intermediates are (rc, N) or (1, N) ----
    ri = jnp.dot(w1_ref[...], img,
                 preferred_element_type=jnp.float32) + b1_ref[...]      # (rc, N)
    rp = jnp.dot(w2_ref[...], pt,
                 preferred_element_type=jnp.float32) + b2_ref[...]      # (rc, N)
    t = jnp.tanh(ri + rp)                                               # EUP tanh

    # fc3 (rc -> 1): broadcast-multiply + cross-sublane reduce (XLU slot),
    # avoids a degenerate 1-row MXU matmul.
    z = jnp.sum(w3_ref[...] * t, axis=0, keepdims=True) + b3_ref[...]   # (1, N)

    # sigmoid: EUP exp + EUP approximate reciprocal (off the VALU path)
    att = pl.reciprocal(1.0 + jnp.exp(-z), approx=True)                 # (1, N)

    # ---- conv1: 1x1 conv with BN folded, then ReLU ----
    y = jnp.dot(wc_ref[...], img,
                preferred_element_type=jnp.float32) + bc_ref[...]       # (pc, N)
    y = jnp.maximum(y, 0.0)

    # ---- gate the image features by the per-point attention weight ----
    out_ref[0] = y * att                  # (1, N) broadcast over sublanes


def ia_layer1(img_feats, point_feats, w1, b1, w2, b2, w3, b3, w_fold, b_fold):
    """img_feats: (B, ic, N)  point_feats: (B, pc, N)  -> (B, pc, N)."""
    B, IC, N = img_feats.shape
    _, PC, _ = point_feats.shape
    RC = w1.shape[0]

    # Reshape 1-D parameters to 2-D columns (broadcast over lanes in-kernel).
    b1_2d = b1.reshape(RC, 1)
    b2_2d = b2.reshape(RC, 1)
    w3_col = w3.reshape(RC, 1)            # fc3 weight as a column for the reduce
    b3_2d = b3.reshape(1, 1)
    bf_2d = b_fold.reshape(PC, 1)

    return pl.pallas_call(
        _ia_layer1_kernel,
        out_shape=jax.ShapeDtypeStruct((B, PC, N), jnp.float32),
        grid=(B,),
        in_specs=[
            pl.BlockSpec((1, IC, N), lambda b: (b, 0, 0)),
            pl.BlockSpec((1, PC, N), lambda b: (b, 0, 0)),
            pl.BlockSpec((RC, IC), lambda b: (0, 0)),
            pl.BlockSpec((RC, 1), lambda b: (0, 0)),
            pl.BlockSpec((RC, PC), lambda b: (0, 0)),
            pl.BlockSpec((RC, 1), lambda b: (0, 0)),
            pl.BlockSpec((RC, 1), lambda b: (0, 0)),
            pl.BlockSpec((1, 1), lambda b: (0, 0)),
            pl.BlockSpec((PC, IC), lambda b: (0, 0)),
            pl.BlockSpec((PC, 1), lambda b: (0, 0)),
        ],
        out_specs=pl.BlockSpec((1, PC, N), lambda b: (b, 0, 0)),
        compiler_params=pltpu.CompilerParams(
            dimension_semantics=("parallel",)),
    )(img_feats, point_feats, w1, b1_2d, w2, b2_2d, w3_col, b3_2d,
      w_fold, bf_2d)


def reference(img, pt, w1, b1, w2, b2, w3, b3, wc, bc, gamma, beta, mean, var,
              eps=1e-5):
    """Pure-JAX reference of the PyTorch IA_Layer1 forward (inference mode)."""
    ri = jnp.einsum('ri,bin->brn', w1, img) + b1[None, :, None]
    rp = jnp.einsum('rp,bpn->brn', w2, pt) + b2[None, :, None]
    att = jax.nn.sigmoid(
        jnp.einsum('or,brn->bon', w3, jnp.tanh(ri + rp)) + b3[None, :, None])
    y = jnp.einsum('oi,bin->bon', wc, img) + bc[None, :, None]
    y = (y - mean[None, :, None]) / jnp.sqrt(var[None, :, None] + eps)
    y = gamma[None, :, None] * y + beta[None, :, None]
    return jnp.maximum(y, 0.0) * att


if __name__ == "__main__":
    # Small shapes consistent with the module: channels = (ic=16, pc=32),
    # rc = pc // 4 = 8, batch = 2, N = 128 points (lane-dense).
    B, IC, PC, N = 2, 16, 32, 128
    RC = PC // 4
    eps = 1e-5

    key = jax.random.PRNGKey(0)
    keys = jax.random.split(key, 12)

    img_feats = jax.random.normal(keys[0], (B, IC, N), jnp.float32)
    point_feats = jax.random.normal(keys[1], (B, PC, N), jnp.float32)

    # fc1: Linear(ic -> rc), fc2: Linear(pc -> rc), fc3: Linear(rc -> 1)
    w1 = jax.random.normal(keys[2], (RC, IC), jnp.float32) * 0.1
    b1 = jax.random.normal(keys[3], (RC,), jnp.float32) * 0.1
    w2 = jax.random.normal(keys[4], (RC, PC), jnp.float32) * 0.1
    b2 = jax.random.normal(keys[5], (RC,), jnp.float32) * 0.1
    w3 = jax.random.normal(keys[6], (1, RC), jnp.float32) * 0.1
    b3 = jax.random.normal(keys[7], (1,), jnp.float32) * 0.1

    # conv1: Conv1d(ic -> pc, kernel 1): weight (pc, ic), bias (pc,)
    wc = jax.random.normal(keys[8], (PC, IC), jnp.float32) * 0.1
    bc = jax.random.normal(keys[9], (PC,), jnp.float32) * 0.1

    # bn1: BatchNorm1d(pc) — deterministic running stats (inference mode)
    gamma = 1.0 + 0.05 * jax.random.normal(keys[10], (PC,), jnp.float32)
    beta = 0.05 * jax.random.normal(keys[11], (PC,), jnp.float32)
    run_mean = jnp.zeros((PC,), jnp.float32)
    run_var = jnp.ones((PC,), jnp.float32)

    # Fold BN into the 1x1 conv (wrapper glue, outside the kernel).
    scale = gamma / jnp.sqrt(run_var + eps)
    w_fold = wc * scale[:, None]
    b_fold = (bc - run_mean) * scale + beta

    out = ia_layer1(img_feats, point_feats, w1, b1, w2, b2, w3, b3,
                    w_fold, b_fold)
    out = jax.block_until_ready(out)

    ref = reference(img_feats, point_feats, w1, b1, w2, b2, w3, b3, wc, bc,
                    gamma, beta, run_mean, run_var, eps)
    ref = jax.block_until_ready(ref)

    assert out.shape == (B, PC, N)
    # Tolerance absorbs the EUP approximate reciprocal inside the in-kernel
    # sigmoid; all matmul accumulation is f32.
    err = float(jnp.max(jnp.abs(out - ref)))
    assert err < 1e-2, f"mismatch vs reference: {err}"

    print("KERNEL_OK")
</pallas_src>

<mosaic_0001>
module attributes {stable_mosaic.version = 11 : i64} {
  func.func @_ia_layer1_kernel(%arg0: i32, %arg1: memref<1x16x128xf32, #tpu.memory_space<vmem>>, %arg2: memref<1x32x128xf32, #tpu.memory_space<vmem>>, %arg3: memref<8x16xf32, #tpu.memory_space<vmem>>, %arg4: memref<8x1xf32, #tpu.memory_space<vmem>>, %arg5: memref<8x32xf32, #tpu.memory_space<vmem>>, %arg6: memref<8x1xf32, #tpu.memory_space<vmem>>, %arg7: memref<8x1xf32, #tpu.memory_space<vmem>>, %arg8: memref<1x1xf32, #tpu.memory_space<vmem>>, %arg9: memref<32x16xf32, #tpu.memory_space<vmem>>, %arg10: memref<32x1xf32, #tpu.memory_space<vmem>>, %arg11: memref<1x32x128xf32, #tpu.memory_space<vmem>>) attributes {dimension_semantics = [#tpu.dimension_semantics<parallel>], iteration_bounds = array<i64: 2>, scalar_prefetch = 0 : i64, scratch_operands = 0 : i64, tpu.core_type = #tpu.core_type<tc>, window_params = [{transform_indices = @transform_0, window_bounds = array<i64: 1, 16, 128>}, {transform_indices = @transform_1, window_bounds = array<i64: 1, 32, 128>}, {pipeline_mode = #tpu.pipeline_mode<synchronous>, transform_indices = @transform_2, window_bounds = array<i64: 8, 16>}, {pipeline_mode = #tpu.pipeline_mode<synchronous>, transform_indices = @transform_3, window_bounds = array<i64: 8, 1>}, {pipeline_mode = #tpu.pipeline_mode<synchronous>, transform_indices = @transform_4, window_bounds = array<i64: 8, 32>}, {pipeline_mode = #tpu.pipeline_mode<synchronous>, transform_indices = @transform_5, window_bounds = array<i64: 8, 1>}, {pipeline_mode = #tpu.pipeline_mode<synchronous>, transform_indices = @transform_6, window_bounds = array<i64: 8, 1>}, {pipeline_mode = #tpu.pipeline_mode<synchronous>, transform_indices = @transform_7, window_bounds = array<i64: 1, 1>}, {pipeline_mode = #tpu.pipeline_mode<synchronous>, transform_indices = @transform_8, window_bounds = array<i64: 32, 16>}, {pipeline_mode = #tpu.pipeline_mode<synchronous>, transform_indices = @transform_9, window_bounds = array<i64: 32, 1>}, {transform_indices = @transform_10, window_bounds = array<i64: 1, 32, 128>}]} {
    %c0 = arith.constant 0 : index
    %c0_0 = arith.constant 0 : index
    %c0_1 = arith.constant 0 : index
    %0 = vector.load %arg1[%c0, %c0_0, %c0_1] : memref<1x16x128xf32, #tpu.memory_space<vmem>>, vector<1x16x128xf32>
    %1 = vector.shape_cast %0 : vector<1x16x128xf32> to vector<16x128xf32>
    %c0_2 = arith.constant 0 : index
    %c0_3 = arith.constant 0 : index
    %c0_4 = arith.constant 0 : index
    %2 = vector.load %arg2[%c0_2, %c0_3, %c0_4] : memref<1x32x128xf32, #tpu.memory_space<vmem>>, vector<1x32x128xf32>
    %3 = vector.shape_cast %2 : vector<1x32x128xf32> to vector<32x128xf32>
    %c0_5 = arith.constant 0 : index
    %c0_6 = arith.constant 0 : index
    %4 = vector.load %arg3[%c0_5, %c0_6] : memref<8x16xf32, #tpu.memory_space<vmem>>, vector<8x16xf32>
    %cst = arith.constant dense<0.000000e+00> : vector<8x128xf32>
    %5 = tpu.matmul %4, %1, %cst {dimension_numbers = #tpu.dot_dimension_numbers<[1], [0], [0], [1], [0, 0, 1, 1], [], []>} : vector<8x16xf32>, vector<16x128xf32>, vector<8x128xf32> -> vector<8x128xf32>
    %c0_7 = arith.constant 0 : index
    %c0_8 = arith.constant 0 : index
    %6 = vector.load %arg4[%c0_7, %c0_8] : memref<8x1xf32, #tpu.memory_space<vmem>>, vector<8x1xf32>
    %7 = vector.broadcast %6 : vector<8x1xf32> to vector<8x128xf32>
    %8 = arith.addf %5, %7 : vector<8x128xf32>
    %c0_9 = arith.constant 0 : index
    %c0_10 = arith.constant 0 : index
    %9 = vector.load %arg5[%c0_9, %c0_10] : memref<8x32xf32, #tpu.memory_space<vmem>>, vector<8x32xf32>
    %cst_11 = arith.constant dense<0.000000e+00> : vector<8x128xf32>
    %10 = tpu.matmul %9, %3, %cst_11 {dimension_numbers = #tpu.dot_dimension_numbers<[1], [0], [0], [1], [0, 0, 1, 1], [], []>} : vector<8x32xf32>, vector<32x128xf32>, vector<8x128xf32> -> vector<8x128xf32>
    %c0_12 = arith.constant 0 : index
    %c0_13 = arith.constant 0 : index
    %11 = vector.load %arg6[%c0_12, %c0_13] : memref<8x1xf32, #tpu.memory_space<vmem>>, vector<8x1xf32>
    %12 = vector.broadcast %11 : vector<8x1xf32> to vector<8x128xf32>
    %13 = arith.addf %10, %12 : vector<8x128xf32>
    %14 = arith.addf %8, %13 : vector<8x128xf32>
    %15 = math.tanh %14 : vector<8x128xf32>
    %c0_14 = arith.constant 0 : index
    %c0_15 = arith.constant 0 : index
    %16 = vector.load %arg7[%c0_14, %c0_15] : memref<8x1xf32, #tpu.memory_space<vmem>>, vector<8x1xf32>
    %17 = vector.broadcast %16 : vector<8x1xf32> to vector<8x128xf32>
    %18 = arith.mulf %17, %15 : vector<8x128xf32>
    %cst_16 = arith.constant dense<0.000000e+00> : vector<128xf32>
    %19 = vector.multi_reduction <add>, %18, %cst_16 [0] : vector<8x128xf32> to vector<128xf32>
    %20 = vector.shape_cast %19 : vector<128xf32> to vector<1x128xf32>
    %c0_17 = arith.constant 0 : index
    %c0_18 = arith.constant 0 : index
    %21 = vector.load %arg8[%c0_17, %c0_18] : memref<1x1xf32, #tpu.memory_space<vmem>>, vector<1x1xf32>
    %22 = vector.broadcast %21 : vector<1x1xf32> to vector<1x128xf32>
    %23 = arith.addf %20, %22 : vector<1x128xf32>
    %cst_19 = arith.constant 0.000000e+00 : f32
    %24 = vector.broadcast %cst_19 : f32 to vector<1x128xf32>
    %25 = arith.subf %24, %23 : vector<1x128xf32>
    %26 = math.exp %25 : vector<1x128xf32>
    %cst_20 = arith.constant 1.000000e+00 : f32
    %27 = vector.broadcast %cst_20 : f32 to vector<1x128xf32>
    %28 = arith.addf %27, %26 : vector<1x128xf32>
    %29 = tpu.reciprocal %28 {approx = true} : vector<1x128xf32> -> vector<1x128xf32>
    %c0_21 = arith.constant 0 : index
    %c0_22 = arith.constant 0 : index
    %30 = vector.load %arg9[%c0_21, %c0_22] : memref<32x16xf32, #tpu.memory_space<vmem>>, vector<32x16xf32>
    %cst_23 = arith.constant dense<0.000000e+00> : vector<32x128xf32>
    %31 = tpu.matmul %30, %1, %cst_23 {dimension_numbers = #tpu.dot_dimension_numbers<[1], [0], [0], [1], [0, 0, 1, 1], [], []>} : vector<32x16xf32>, vector<16x128xf32>, vector<32x128xf32> -> vector<32x128xf32>
    %c0_24 = arith.constant 0 : index
    %c0_25 = arith.constant 0 : index
    %32 = vector.load %arg10[%c0_24, %c0_25] : memref<32x1xf32, #tpu.memory_space<vmem>>, vector<32x1xf32>
    %33 = vector.broadcast %32 : vector<32x1xf32> to vector<32x128xf32>
    %34 = arith.addf %31, %33 : vector<32x128xf32>
    %cst_26 = arith.constant 0.000000e+00 : f32
    %35 = vector.broadcast %cst_26 : f32 to vector<32x128xf32>
    %36 = arith.maximumf %34, %35 : vector<32x128xf32>
    %37 = vector.broadcast %29 : vector<1x128xf32> to vector<32x128xf32>
    %38 = arith.mulf %36, %37 : vector<32x128xf32>
    %c0_27 = arith.constant 0 : index
    %c0_28 = arith.constant 0 : index
    %c0_29 = arith.constant 0 : index
    %39 = vector.load %arg11[%c0_27, %c0_28, %c0_29] : memref<1x32x128xf32, #tpu.memory_space<vmem>>, vector<1x32x128xf32>
    %40 = vector.shape_cast %39 : vector<1x32x128xf32> to vector<32x128xf32>
    %41 = vector.shape_cast %38 : vector<32x128xf32> to vector<1x32x128xf32>
    tpu.vector_store %arg11[%c0_27, %c0_28, %c0_29], %41 {strides = array<i32>} : memref<1x32x128xf32, #tpu.memory_space<vmem>>, vector<1x32x128xf32>,
    return
  }
  func.func @transform_0(%arg0: i32) -> (i32, i32, i32) {
    %c0_i32 = arith.constant 0 : i32
    %c0_i32_0 = arith.constant 0 : i32
    %c0_i32_1 = arith.constant 0 : i32
    return %arg0, %c0_i32, %c0_i32_0 : i32, i32, i32
  }
  func.func @transform_1(%arg0: i32) -> (i32, i32, i32) {
    %c0_i32 = arith.constant 0 : i32
    %c0_i32_0 = arith.constant 0 : i32
    %c0_i32_1 = arith.constant 0 : i32
    return %arg0, %c0_i32, %c0_i32_0 : i32, i32, i32
  }
  func.func @transform_2(%arg0: i32) -> (i32, i32) {
    %c0_i32 = arith.constant 0 : i32
    %c0_i32_0 = arith.constant 0 : i32
    %c0_i32_1 = arith.constant 0 : i32
    return %c0_i32, %c0_i32_0 : i32, i32
  }
  func.func @transform_3(%arg0: i32) -> (i32, i32) {
    %c0_i32 = arith.constant 0 : i32
    %c0_i32_0 = arith.constant 0 : i32
    %c0_i32_1 = arith.constant 0 : i32
    return %c0_i32, %c0_i32_0 : i32, i32
  }
  func.func @transform_4(%arg0: i32) -> (i32, i32) {
    %c0_i32 = arith.constant 0 : i32
    %c0_i32_0 = arith.constant 0 : i32
    %c0_i32_1 = arith.constant 0 : i32
    return %c0_i32, %c0_i32_0 : i32, i32
  }
  func.func @transform_5(%arg0: i32) -> (i32, i32) {
    %c0_i32 = arith.constant 0 : i32
    %c0_i32_0 = arith.constant 0 : i32
    %c0_i32_1 = arith.constant 0 : i32
    return %c0_i32, %c0_i32_0 : i32, i32
  }
  func.func @transform_6(%arg0: i32) -> (i32, i32) {
    %c0_i32 = arith.constant 0 : i32
    %c0_i32_0 = arith.constant 0 : i32
    %c0_i32_1 = arith.constant 0 : i32
    return %c0_i32, %c0_i32_0 : i32, i32
  }
  func.func @transform_7(%arg0: i32) -> (i32, i32) {
    %c0_i32 = arith.constant 0 : i32
    %c0_i32_0 = arith.constant 0 : i32
    %c0_i32_1 = arith.constant 0 : i32
    return %c0_i32, %c0_i32_0 : i32, i32
  }
  func.func @transform_8(%arg0: i32) -> (i32, i32) {
    %c0_i32 = arith.constant 0 : i32
    %c0_i32_0 = arith.constant 0 : i32
    %c0_i32_1 = arith.constant 0 : i32
    return %c0_i32, %c0_i32_0 : i32, i32
  }
  func.func @transform_9(%arg0: i32) -> (i32, i32) {
    %c0_i32 = arith.constant 0 : i32
    %c0_i32_0 = arith.constant 0 : i32
    %c0_i32_1 = arith.constant 0 : i32
    return %c0_i32, %c0_i32_0 : i32, i32
  }
  func.func @transform_10(%arg0: i32) -> (i32, i32, i32) {
    %c0_i32 = arith.constant 0 : i32
    %c0_i32_0 = arith.constant 0 : i32
    %c0_i32_1 = arith.constant 0 : i32
    return %arg0, %c0_i32, %c0_i32_0 : i32, i32, i32
  }
}

</mosaic_0001>

<bundles_post_ra>
// kernel: tpu_custom_call.1
= control target key start
LH: loop header
LB: loop body
LE: loop exit
PB: predicated region body
PF: predicated region fallthrough
CT: control target
= control target key end

     0   :  { %s1323_s0 = inlined_call_operand.vmem [shape: f32[2,16,128], index: 0, kind: input, shape index: {}]   ;;  %s1324_s1 = inlined_call_operand.vmem [shape: f32[2,32,128], index: 1, kind: input, shape index: {}]   ;;  %s1325_s2 = inlined_call_operand.hbm [shape: f32[8,16], index: 2, kind: input, shape index: {}]   ;;  %s1326_s3 = inlined_call_operand.vmem [shape: f32[8,1], index: 3, kind: input, shape index: {}]   ;;  %s1327_s4 = inlined_call_operand.vmem [shape: f32[8,32], index: 4, kind: input, shape index: {}]   ;;  %s1328_s5 = inlined_call_operand.vmem [shape: f32[8,1], index: 5, kind: input, shape index: {}]   ;;  %s1329_s6 = inlined_call_operand.vmem [shape: f32[8,1], index: 6, kind: input, shape index: {}]   ;;  %s1330_s7 = inlined_call_operand.<no memory space> [shape: f32[1,1], index: 7, kind: input, shape index: {}]   ;;  %s1331_s8 = inlined_call_operand.vmem [shape: f32[32,16], index: 8, kind: input, shape index: {}]   ;;  %s1332_s9 = inlined_call_operand.vmem [shape: f32[32,1], index: 9, kind: input, shape index: {}]   ;;  %s1333_s10 = inlined_call_operand.hbm [shape: f32[2,32,128], index: 10, kind: output, shape index: {}]  }
   0x1   :  { %v15_v0 = vstv %s1330_s7 }
   0x2   :  { %16 = vst [vmem:[#allocation2] sm:$0x1] %v15_v0 }
   0x3   :  { %17 = vsyncpa [#allocation4], 0 }
   0x4   :  { %18 = vsyncpa [#allocation5], 0 }
   0x5   :  { %20 = vsyncpa [#allocation5 + $0x1], 0  ;;  %s1139_s15 = smov 0   ;;  %s1141_s16 = smov 0  }
   0x6   :  { %s1143_s17 = smov 0   ;;  %s1145_s18 = smov 0  }
   0x7 LB: > { %s1160_s7 = sadd.s32 4294967295, %s1071_s18   ;;  %s829_s19 = sadd.s32 4294967294, %s1071_s18   ;;  %s1071_s18 = sphi %s1145_s18, %s1349_s18   ;;  %s1067_s17 = sphi %s1143_s17, %s1348_s17   ;;  %s1063_s16 = sphi %s1141_s16, %s1347_s16   ;;  %s1059_s15 = sphi %s1139_s15, %s1346_s15  }
   0x8   : > { %s1164_s20 = sadd.s32 1, %s1071_s18   ;;  %s253_s21 = sadd.s32 1, %s1067_s17 }
   0x9   : > { %s250_s22 = ssub.s32 %s1071_s18, %s1164_s20  ;;  %p263_p0 = scmp.ne.s32.totalorder %s1067_s17, %s1063_s16 }
   0xa   : > { %p251_p1 = scmp.eq.s32.totalorder %s250_s22, 0  ;;  %p264_p2 = scmp.eq.s32.totalorder %s1160_s7, 1 }
   0xb   : > { %p269_p3 = scmp.ne.s32.totalorder %s1063_s16, %s1059_s15  ;;  %p270_p4 = scmp.eq.s32.totalorder %s829_s19, 1 }
   0xc   : > { %s1175_s23 = scalar_select %p251_p1, %s1067_s17, %s253_s21  }
   0xd   : > { %p1177_p5 = por %p264_p2, %p263_p0  ;;  %p1181_p6 = por %p270_p4, %p269_p3 }
   0xe   : > { %p830_p7 = scmp.ge.s32.totalorder %s1071_s18, 1  ;;  %p277_p8 = scmp.lt.s32.totalorder %s1071_s18, 3 }
   0xf   : > { %s1337_s24 = scalar_select %p1177_p5, 1, 0 }
  0x10   : > { %s1338_s25 = scalar_select %p1181_p6, 1, 0 }
  0x11   : > { %p1334_p9 = scmp.eq.s32.totalorder %s1160_s7, 0  ;;  %p1188_p10 = pnand %p830_p7, %p277_p8 }
  0x12   : > { %s1073_s27 = smov [#allocation3]   ;;  %s977_s12 = scalar_lea.hbm %s1325_s2, 128 }
  0x13   : > { %s1339_s26 = scalar_select %p1188_p10, 1, 0 }
  0x14   : > { %s290_s28 = sshll.u32 %s1073_s27, 4  ;;  %p919_p11 = pneg %p1188_p10  ;;  %s291_s28 = int_to_ptr.vmem [resolvable:$true] %s290_s28 }
  0x15   : > { %p978_p13 = scmp.ne.s32.totalorder %s1325_s2, %s977_s12  ;;  %p984_p3 = scmp.lt.u32.totalorder %s977_s12, %s1325_s2 }
  0x16   : > { %p1196_p12 = pnand %p1334_p9, %p919_p11 }
  0x18   : > { %p979_p0 = pneg %p1196_p12 }
  0x1a   : > { %p980_p1 = pnand %p979_p0, %p978_p13 }
  0x1c   : > { %p981_p2 = pneg %p980_p1 }
  0x1e   : > { %p986_p4 = pnand %p984_p3, %p981_p2 }
  0x20   : > { %989 = shalt.err (!%p986_p4)
}
  0x21   : > { %s990_s22 = scalar_lea.vmem %s291_s28, 128  ;;  %p998_p9 = scmp.lt.s32.totalorder %s291_s28, %s291_s28 }
  0x22   : > { %p991_p7 = scmp.ne.s32.totalorder %s291_s28, %s990_s22  ;;  %p999_p6 = scmp.lt.s32.totalorder %s990_s22, %s990_s22 }
  0x24   : > { %p993_p8 = pnand %p991_p7, %p979_p0  ;;  %p1000_p5 = por %p999_p6, %p998_p9 }
  0x26   : > { %p994_p11 = pneg %p993_p8 }
  0x28   : > { %p1001_p10 = pnand %p1000_p5, %p994_p11 }
  0x2a   : > { %1004 = shalt.err (!%p1001_p10)
}
  0x2b   : > { %922 = dma.hbm_to_vmem [thread:$0]  (!%p1196_p12), %s1325_s2, 128, %s291_s28, [#allocation4]  }
  0x2c   : > { %p1341_p13 = scmp.ne.s32.totalorder %s1339_s26, 0 }
  0x2d   : > { %p1342_p1 = scmp.eq.s32.totalorder (!%p1341_p13), %s1160_s7, 0 }
  0x2e   : > { %340 = sbr.rel (%p1341_p13) target bundleno = 361 (0x169), region = 60 }
  0x35   : > { %1050 = dma.done.wait (%p1342_p1), [#allocation4], 128   ;;  %p1343_p0 = pmov %p1342_p1 }
  0x36   : > { %p383_p6 = scmp.lt.s32.totalorder %s1160_s7, 1  ;;  %v1074_v1 = vmov 0.0|0.0   ;;  %vm1075_vm0 = vmmov 0   ;;  %v1076_v2 = vmov 0.0   ;;  %v1077_v3 = vmov 0   ;;  %v592_v7 = vld [vmem:[%s1331_s8] sm:$0xff] }
  0x37   : > { %1052 = vsyncadd (%p1343_p0), [#allocation4], 4294967168  ;;  %896 = vmatprep.subr.bf16.mxu0 %v1074_v1  ;;  %872 = vmatprep.mubr.msk.f32.mxu0 %vm1075_vm0, %v1076_v2  ;;  %vm406_vm1 = vcmask 130048   ;;  %v399_v10 = vld [vmem:[#allocation3] sm:$0xff]  ;;  %v594_v16 = vld [vmem:[%s1331_s8 + $0x10] sm:$0xff]  ;;  %vm487_vm2 = vcmask 261120   ;;  %v582_v40 = vlaneseq }
  0x38   : > { %s384_s29 = scalar_select %p383_p6, %s1160_s7, 1  ;;  %969 = vset.pattern.permute.xlu0 %v1077_v3  ;;  %970 = vset.pattern.permute.xlu1 %v1077_v3  ;;  %v593_v12 = vld [vmem:[%s1331_s8 + $0x8] sm:$0xff]  ;;  %v400_v15 = vld [vmem:[%s1326_s3] sm:$0xff]  ;;  %v595_v21 = vld [vmem:[%s1331_s8 + $0x18] sm:$0xff] }
  0x39   : > { %890 = vmatprep.mubr.msk.f32.mxu1 %vm406_vm1, %v592_v7  ;;  %403 = vperm.xlu0 %969, %v400_v15   ;;  %v563_v17 = vld [vmem:[%s1329_s6] sm:$0xff]  ;;  %v597_v24 = vld [vmem:[%s1332_s9 + $0x8] sm:$0xff]  ;;  %v598_v25 = vld [vmem:[%s1332_s9 + $0x10] sm:$0xff]  ;;  %v583_v43 = vshrl.u32 %v582_v40, 7  ;;  %p1344_p9 = scmp.ne.s32.totalorder %s1337_s24, 0  ;;  %s1078_s14 = smov [#allocation6]  }
  0x3a   : > { %s851_s26 = sshll.u32 %s384_s29, 4  ;;  %s852_s28 = sshll.u32 %s384_s29, 5  ;;  %v481_v18 = vld [vmem:[%s1328_s5] sm:$0xff]  ;;  %566 = vperm.xlu1 %970, %v563_v17   ;;  %v599_v26 = vld [vmem:[%s1332_s9 + $0x18] sm:$0xff] }
  0x3b   : > { %s387_s13 = scalar_lea.vmem %s1323_s0, %s851_s26  ;;  %s392_s21 = scalar_lea.vmem %s1324_s1, %s852_s28  ;;  %v576_v20 = vld [vmem:[#allocation2] sm:$0x1]  ;;  %v584_v46 = vsub.s32 0, %v583_v43 }
  0x3c   : > { %v393_v4 = vld [vmem:[%s387_s13] sm:$0xff]  ;;  %v394_v5 = vld [vmem:[%s387_s13 + $0x8] sm:$0xff]  ;;  %v397_v13 = vld [vmem:[%s392_s21 + $0x10] sm:$0xff]  ;;  %s853_s26 = sshll.u32 %s1160_s7, 9  ;;  %s1009_s19 = sshll.u32 %s1078_s14, 4  ;;  %s1010_s19 = int_to_ptr.vmem [resolvable:$false] %s1009_s19 }
  0x3d   : > { %v897_v6 = vpack.c.bf16 %v394_v5, %v393_v4  ;;  %v395_v8 = vld [vmem:[%s392_s21] sm:$0xff]  ;;  %v396_v9 = vld [vmem:[%s392_s21 + $0x8] sm:$0xff]  ;;  %v398_v14 = vld [vmem:[%s392_s21 + $0x18] sm:$0xff]  ;;  %484 = vperm.xlu0 %969, %v481_v18   ;;  %s380_s21 = sand.u32 1, %s1063_s16   ;;  %s1280_s12 = scalar_lea.hbm %s1333_s10, %s853_s26 }
  0x3e   : > { %v900_v11 = vpack.c.bf16 %v396_v9, %v395_v8  ;;  %v903_v19 = vpack.c.bf16 %v398_v14, %v397_v13  ;;  %v596_v22 = vld [vmem:[%s1332_s9] sm:$0xff]  ;;  %579 = vperm.xlu1 %970, %v576_v20   ;;  %s835_s27 = sshll.u32 %s380_s21, 5  ;;  %s1282_s7 = scalar_lea.sflag [#allocation5], %s380_s21 }
  0x3f   : > { %898 = vmatpush3.bf16.msra.mxu0 %v897_v6  ;;  %906 = vmatprep.subr.bf16.mxu1 %v897_v6  ;;  %v480_v23 = vld [vmem:[%s1327_s4] sm:$0xff]  ;;  %s382_s30 = scalar_lea.vmem [#allocation6], %s835_s27  ;;  %s1011_s22 = scalar_lea.vmem %s1010_s19, 1024 }
  0x40   : > { %908 = vmatpush3.bf16.msra.mxu1 %v897_v6  ;;  %899 = vmatprep.subr.bf16.mxu0 %v1074_v1  ;;  %s743_s29 = sshll.u32 %s382_s30, 4  ;;  %s1275_s29 = int_to_ptr.vmem [resolvable:$true] %s743_s29 }
  0x41   : > { %602 = vperm.xlu0 %969, %v596_v22   ;;  %s1005_s13 = scalar_lea.vmem %s1275_s29, 512  ;;  %p1012_p2 = scmp.lt.s32.totalorder %s1275_s29, %s1010_s19 }
  0x42   : > { %873 = vmatmul.mubr.msk.f32.vlgmr.msra.gmra.mrb[0].mxu0 %vm406_vm1, %v399_v10  ;;  %607 = vperm.xlu1 %970, %v597_v24   ;;  %p1006_p5 = scmp.ne.s32.totalorder %s1275_s29, %s1005_s13  ;;  %p1013_p3 = scmp.lt.s32.totalorder %s1011_s22, %s1005_s13 }
  0x43   : > { %901 = vmatpush3.bf16.msra.mxu0 %v900_v11  ;;  %891 = vmatmul.mubr.msk.f32.vlgmr.msra.gmra.mrb[0].mxu1 %vm406_vm1, %v593_v12 }
  0x44   : > { %902 = vmatprep.subr.bf16.mxu0 %v1074_v1  ;;  %893 = vmatprep.mubr.msk.f32.mxu1 %vm406_vm1, %v594_v16  ;;  %p1007_p10 = pnand %p1006_p5, %p1344_p9  ;;  %p1014_p4 = por %p1013_p3, %p1012_p2 }
  0x45   : > { %883 = vmatprep.mubr.msk.f32.mxu0 %vm1075_vm0, %v1076_v2  ;;  %612 = vperm.xlu0 %969, %v598_v25  }
  0x46   : > { %617 = vperm.xlu1 %970, %v599_v26   ;;  %p1008_p12 = pneg %p1007_p10 }
  0x47   : > { %904 = vmatpush3.bf16.msra.mxu0 %v903_v19  ;;  %894 = vmatmul.mubr.msk.f32.gmra.mrb[2].mxu1 %vm406_vm1, %v595_v21 }
  0x48   : > { %p1015_p7 = pnand %p1014_p4, %p1008_p12 }
  0x4a   : > { %884 = vmatmul.mubr.msk.f32.vlgmr.msra.gmra.mrb[0].mxu0 %vm487_vm2, %v480_v23 }
  0xb8   : > { %v404_v27 = vpop.permute.xlu0 %403 }
  0xb9   : > { %v567_v38 = vpop.permute.xlu1 %566 }
  0xbc   : > { %v485_v31 = vpop.permute.xlu0 %484 }
  0xbd   : > { %v909_v33 = vadd.f32 %v485_v31, %v404_v27  ;;  %v580_v48 = vpop.permute.xlu1 %579 }
  0xbe   : > { %v585_v50 = vrot.slane %v580_v48, %v584_v46 }
  0xc0   : > { %v603_v56 = vpop.permute.xlu0 %602 }
  0xc1   : > { %v608_v54 = vpop.permute.xlu1 %607 }
  0xc4   : > { %v613_v59 = vpop.permute.xlu0 %612 }
  0xc5   : > { %v618_v58 = vpop.permute.xlu1 %617 }
 0x116   : > { %v892_v28 = vpop.f32.mrb[0].mxu1 }
 0x117   : > { %v698_v29 = vpop.f32.mrb[1].mxu1  ;;  %v704_v62 = vadd.f32 %v892_v28, %v608_v54 }
 0x118   : > { %v699_v60 = vadd.f32 %v698_v29, %v603_v56 }
 0x119   : > { %v718_v2 = vmax.f32 %v704_v62, 0.0 }
 0x11a   : > { %v895_v30 = vpop.f32.mrb[2].mxu1  ;;  %v717_v0 = vmax.f32 %v699_v60, 0.0 }
 0x11b   : > { %v708_v32 = vpop.f32.mrb[3].mxu1  ;;  %v714_v63 = vadd.f32 %v895_v30, %v618_v58 }
 0x11c   : > { %v709_v61 = vadd.f32 %v708_v32, %v613_v59 }
 0x11d   : > { %v557_v34 = vpop.f32.mrb[0].mxu0  ;;  %v720_v3 = vmax.f32 %v714_v63, 0.0 }
 0x11e   : > { %v910_v35 = vadd.f32 %v909_v33, %v557_v34  ;;  %v885_v36 = vpop.f32.mrb[1].mxu0  ;;  %v719_v1 = vmax.f32 %v709_v61, 0.0 }
 0x120   : > { %971 = vtanh.f32 %v910_v35 }
 0x12a   : > { %v972_v37 = vpop.eup %971 }
 0x12b   : > { %v569_v39 = vmul.f32 %v972_v37, %v567_v38 }
 0x12d   : > { %v570_v41 = vrot.slane %v569_v39, 4 }
 0x12f   : > { %v571_v42 = vadd.f32 %v570_v41, %v569_v39 }
 0x131   : > { %v572_v44 = vrot.slane %v571_v42, 2 }
 0x133   : > { %v573_v45 = vadd.f32 %v572_v44, %v571_v42 }
 0x135   : > { %v574_v47 = vrot.slane %v573_v45, 1 }
 0x137   : > { %v575_v49 = vadd.f32 %v574_v47, %v573_v45 }
 0x139   : > { %v586_v51 = vadd.f32 %v585_v50, %v575_v49 }
 0x13b   : > { %v587_v52 = vsub.f32 0.0, %v586_v51 }
 0x13d   : > { %v588_v53 = vmul.f32 1.442695, %v587_v52 }
 0x13f   : > { %973 = vpow2.f32 %v588_v53 }
 0x149   : > { %v974_v55 = vpop.eup %973 }
 0x14a   : > { %v590_v57 = vadd.f32 1.0, %v974_v55 }
 0x14c   : > { %975 = vrcp.f32 %v590_v57 }
 0x156   : > { %v976_v4 = vpop.eup %975 }
 0x157   : > { %v721_v5 = vmul.f32 %v976_v4, %v717_v0  ;;  %v722_v6 = vmul.f32 %v976_v4, %v718_v2  ;;  %v723_v7 = vmul.f32 %v976_v4, %v719_v1  ;;  %v724_v8 = vmul.f32 %v976_v4, %v720_v3 }
 0x159   : > { %725 = vst [vmem:[%s382_s30] sm:$0xff] %v721_v5  ;;  %726 = vst [vmem:[%s382_s30 + $0x8] sm:$0xff] %v722_v6 }
 0x15a   : > { %727 = vst [vmem:[%s382_s30 + $0x10] sm:$0xff] %v723_v7  ;;  %728 = vst [vmem:[%s382_s30 + $0x18] sm:$0xff] %v724_v8 }
 0x15b   : > { %1018 = shalt.err (!%p1015_p7)
}
 0x15c   : > { %s1019_s21 = scalar_lea.hbm %s1280_s12, 512  ;;  %s1023_s26 = scalar_lea.hbm %s1333_s10, 1024 }
 0x15d   : > { %p1020_p8 = scmp.ne.s32.totalorder %s1280_s12, %s1019_s21  ;;  %p1024_p1 = scmp.lt.u32.totalorder %s1280_s12, %s1333_s10 }
 0x15e   : > { %p1025_p0 = scmp.lt.u32.totalorder %s1023_s26, %s1019_s21  ;;  %p1027_p5 = scmp.lt.u32.totalorder %s1019_s21, %s1280_s12 }
 0x15f   : > { %p1021_p11 = pnand %p1020_p8, %p1344_p9 }
 0x160   : > { %p1026_p6 = por %p1025_p0, %p1024_p1 }
 0x161   : > { %p1022_p13 = pneg %p1021_p11 }
 0x162   : > { %p1028_p10 = por %p1027_p5, %p1026_p6 }
 0x164   : > { %p1029_p12 = pnand %p1028_p10, %p1022_p13 }
 0x166   : > { %1032 = shalt.err (!%p1029_p12)
}
 0x167   : > { %s1079_s13 = smov 128   ;;  %s1080_s14 = smov 8  }
 0x168   : > { %917 = dma.vmem_to_hbm [thread:$0]  (%p1344_p9), %s1275_s29, 512, %s1280_s12, %s1282_s7, %s1079_s13, %s1079_s13, %s1080_s14  }
 0x169 PF: > { %p929_p2 = scmp.ge.s32.totalorder %s1071_s18, 2  ;;  %s758_s19 = sand.u32 1, %s1059_s15  }
 0x16a   : > { %p1345_p3 = scmp.ne.s32.totalorder %s1338_s25, 0  ;;  %s759_s22 = scalar_lea.sflag [#allocation5], %s758_s19 }
 0x16c   : > { %p924_p4 = pnand %p929_p2, %p1345_p3 }
 0x16e   : > { %1054 = dma.done.wait (!%p924_p4), %s759_s22, 512  }
 0x16f   : > { %1056 = vsyncadd (!%p924_p4), %s759_s22, 4294966784  ;;  %p23_p7 = scmp.ge.s32.totalorder %s1164_s20, 4   ;;  %s1346_s15 = smov %s1063_s16 }
 0x170   : > { %s1347_s16 = smov %s1067_s17  ;;  %s1348_s17 = smov %s1175_s23 }
 0x171   : > { %s1349_s18 = smov %s1164_s20  ;;  %25 = sbr.rel (!%p23_p7) target bundleno = 7 (0x7), region = 103 }
 0x178   :  { %764 = vsyncpa [#allocation4], 1 }
 0x179   :  { %766 = vsyncpa [#allocation4 + $0x1], 1 }
 0x17a   :  { %767 = vsyncpa [#allocation5], 1 }
 0x17b   :  { %769 = vsyncpa [#allocation5 + $0x1], 1 }

</bundles_post_ra>
